<compile_context>
chip_gen: v6e
topology: v6e:2x2x1
jax: 0.10.0
libtpu: 0.0.40
codegen_flags: <defaults>
</compile_context>

<pallas_src>
import functools

import jax
import jax.numpy as jnp
from jax.experimental import pallas as pl
from jax.experimental.pallas import tpu as pltpu


# ---------------------------------------------------------------------------
# Kernel 1: word-topic matrix beta (weights-only, runs once per weight set).
#   beta_kv[k, v] = softmax_over_v( (rho @ wt)[v, k] )
# computed lane-dense as agree_kv = wt^T @ rho^T  ([K, V]), softmax along the
# lane (vocab) axis -- no transpose inside the kernel.
# ---------------------------------------------------------------------------
def beta_kernel(wt_t_ref, rho_t_ref, beta_ref):
    f32 = jnp.float32
    agree = jnp.dot(wt_t_ref[...], rho_t_ref[...],
                    preferred_element_type=f32)            # [K, V]
    m = jnp.max(agree, axis=-1, keepdims=True)
    e = jnp.exp(agree - m)
    beta = e / jnp.sum(e, axis=-1, keepdims=True)          # exact denominator
    beta_ref[...] = beta.astype(beta_ref.dtype)


def compute_beta(rho, wt):
    """Lane-dense [K, V] word-topic matrix, stored bf16 (decode MXU operand)."""
    V, E = rho.shape
    K = wt.shape[1]
    wt_t = wt.T.astype(jnp.bfloat16)                       # [K, E]
    rho_t = rho.T.astype(jnp.bfloat16)                     # [E, V]
    return pl.pallas_call(
        beta_kernel,
        out_shape=jax.ShapeDtypeStruct((K, V), jnp.bfloat16),
        grid=(1,),
        in_specs=[pl.BlockSpec((K, E), lambda i: (0, 0)),
                  pl.BlockSpec((E, V), lambda i: (0, 0))],
        out_specs=pl.BlockSpec((K, V), lambda i: (0, 0)),
    )(wt_t, rho_t)


# ---------------------------------------------------------------------------
# Kernel 2: per-document path, tiled over a "parallel" batch grid axis.
# Weights (constant index_maps) stay VMEM-resident across batch tiles.
# ---------------------------------------------------------------------------
def dan_etm_kernel(bows_ref, rho_ref, wh_ref, bh_ref, wp_ref, bp_ref,
                   wmuls_ref, bmuls_ref, beta_ref, out_ref, *, inv_b):
    f32 = jnp.float32
    bf16 = jnp.bfloat16
    bows = bows_ref[...].astype(f32)                       # [TB, V]
    E = rho_ref.shape[1]
    K = beta_ref.shape[0]

    # --- encode: fold row-normalization into the embedding matmul ---
    inv_s = 1.0 / jnp.sum(bows, axis=1, keepdims=True)     # [TB, 1]
    x = jnp.dot(bows.astype(bf16), rho_ref[...],           # bf16 x bf16 -> f32
                preferred_element_type=f32) * inv_s        # [TB, E]

    # --- Highway network: 2 layers, fused [linear | gate] weight per layer ---
    bh = bh_ref[...]                                       # [2, 2E] f32
    for layer in range(2):                                 # static unroll
        w = wh_ref[layer]                                  # [E, 2E] f32
        h = jnp.dot(x, w, preferred_element_type=f32) + bh[layer:layer + 1, :]
        nonlin = jnp.maximum(h[:, :E], 0.0)                # linear path (ReLU)
        gate = jax.nn.sigmoid(h[:, E:])                    # gate path
        x = gate * nonlin + (1.0 - gate) * x

    # final Linear of q_theta (dropout is identity in eval mode)
    q = jnp.dot(x, wp_ref[...], preferred_element_type=f32) + bp_ref[...]

    # fused variational heads [mu | logsigma]
    muls = jnp.dot(q, wmuls_ref[...], preferred_element_type=f32) + bmuls_ref[...]
    mu = muls[:, :K]
    ls = muls[:, K:]

    # KL divergence partial sum (pre-scaled by 1/B; wrapper just sums tiles)
    kld_p = (-0.5 * inv_b) * jnp.sum(1.0 + ls - mu * mu - jnp.exp(ls))

    # topic proportions: theta = softmax(mu)   (eval: z = mu)
    m = jnp.max(mu, axis=-1, keepdims=True)
    e = jnp.exp(mu - m)
    theta = e * pl.reciprocal(jnp.sum(e, axis=-1, keepdims=True), approx=True)

    # decode with precomputed lane-dense beta [K, V]; recon partial (x 1/B)
    res = jnp.dot(theta.astype(bf16), beta_ref[...],
                  preferred_element_type=f32)              # [TB, V]
    preds = jnp.log(res + 1e-6)
    recon_p = -inv_b * jnp.sum(preds * bows)

    # single merged per-tile output tile: lane 0 = recon partial, lane 1 = kld
    col = jax.lax.broadcasted_iota(jnp.int32, (8, 128), 1)
    tile = jnp.where(col == 0, recon_p, jnp.where(col == 1, kld_p, 0.0))
    out_ref[...] = tile[None].astype(out_ref.dtype)


def _pack_params(p):
    """Fuse/stack the module weights into the resident kernel inputs."""
    wh = jnp.stack([jnp.concatenate([p["wl0"], p["wg0"]], axis=1),
                    jnp.concatenate([p["wl1"], p["wg1"]], axis=1)], axis=0)      # [2, E, 2E]
    bh = jnp.stack([jnp.concatenate([p["bl0"][0], p["bg0"][0]], axis=0),
                    jnp.concatenate([p["bl1"][0], p["bg1"][0]], axis=0)], axis=0)  # [2, 2E]
    wmuls = jnp.concatenate([p["wmu"], p["wls"]], axis=1)                        # [E, 2K]
    bmuls = jnp.concatenate([p["bmu"], p["bls"]], axis=1)                        # [1, 2K]
    rho_bf16 = p["rho"].astype(jnp.bfloat16)                                     # [V, E]
    return [rho_bf16, wh, bh, p["wp"], p["bp"], wmuls, bmuls]


def dan_etm_forward(bows, params, *, batch_tile=128):
    B, V = bows.shape

    # weights-only beta is computed once per weight set (hoisted off hot path)
    beta_kv = compute_beta(params["rho"], params["wt"])                          # [K, V] bf16
    weights = _pack_params(params) + [beta_kv]

    tb = batch_tile if (B % batch_tile == 0) else B
    grid_b = B // tb

    def resident_spec(a):
        nd = a.ndim
        return pl.BlockSpec(a.shape, lambda i, _nd=nd: (0,) * _nd)

    kernel = functools.partial(dan_etm_kernel, inv_b=1.0 / float(B))
    out = pl.pallas_call(
        kernel,
        out_shape=jax.ShapeDtypeStruct((grid_b, 8, 128), jnp.float32),
        grid_spec=pltpu.PrefetchScalarGridSpec(
            num_scalar_prefetch=0,
            grid=(grid_b,),
            in_specs=[pl.BlockSpec((tb, V), lambda i: (i, 0))]
                     + [resident_spec(a) for a in weights],
            out_specs=pl.BlockSpec((1, 8, 128), lambda i: (i, 0, 0)),
        ),
        compiler_params=pltpu.CompilerParams(
            dimension_semantics=("parallel",)),
    )(bows, *weights)

    recon = jnp.sum(out[:, 0, 0])
    kld = jnp.sum(out[:, 0, 1])
    return recon, kld


def dan_etm_reference(bows, p):
    """Pure-JAX f32 reference matching the PyTorch eval-mode forward."""
    bows = bows.astype(jnp.float32)
    nb = bows / jnp.sum(bows, axis=1, keepdims=True)
    x = nb @ p["rho"]
    for wl, bl, wg, bg in [(p["wl0"], p["bl0"], p["wg0"], p["bg0"]),
                           (p["wl1"], p["bl1"], p["wg1"], p["bg1"])]:
        gate = jax.nn.sigmoid(x @ wg + bg)
        nonlin = jax.nn.relu(x @ wl + bl)
        x = gate * nonlin + (1 - gate) * x
    q = x @ p["wp"] + p["bp"]
    mu = q @ p["wmu"] + p["bmu"]
    ls = q @ p["wls"] + p["bls"]
    kld = -0.5 * jnp.mean(jnp.sum(1 + ls - mu ** 2 - jnp.exp(ls), axis=-1))
    theta = jax.nn.softmax(mu, axis=-1)
    beta = jax.nn.softmax(p["rho"] @ p["wt"], axis=0).T
    preds = jnp.log(theta @ beta + 1e-6)
    recon = jnp.mean(-jnp.sum(preds * bows, axis=1))
    return recon, kld


def init_params(key, vocab_size, word_embed_dim, num_topics):
    V, E, K = vocab_size, word_embed_dim, num_topics
    keys = jax.random.split(key, 16)

    def lin_w(k, fan_in, shape):
        bound = 1.0 / jnp.sqrt(fan_in)
        return jax.random.uniform(k, shape, jnp.float32, -bound, bound)

    p = {}
    p["rho"] = lin_w(keys[0], E, (V, E))                 # word_embed [V, E]
    # Highway layer 0 / 1 (weights stored [in, out])
    p["wl0"] = lin_w(keys[1], E, (E, E)); p["bl0"] = lin_w(keys[2], E, (1, E))
    p["wg0"] = lin_w(keys[3], E, (E, E)); p["bg0"] = lin_w(keys[4], E, (1, E))
    p["wl1"] = lin_w(keys[5], E, (E, E)); p["bl1"] = lin_w(keys[6], E, (1, E))
    p["wg1"] = lin_w(keys[7], E, (E, E)); p["bg1"] = lin_w(keys[8], E, (1, E))
    # q_theta final Linear(E, E)
    p["wp"] = lin_w(keys[9], E, (E, E)); p["bp"] = lin_w(keys[10], E, (1, E))
    # mu / logsigma heads Linear(E, K)
    p["wmu"] = lin_w(keys[11], E, (E, K)); p["bmu"] = lin_w(keys[12], E, (1, K))
    p["wls"] = lin_w(keys[13], E, (E, K)); p["bls"] = lin_w(keys[14], E, (1, K))
    # topic_embed Linear(E, K, bias=False) stored as [E, K]
    p["wt"] = lin_w(keys[15], E, (E, K))
    return p


if __name__ == "__main__":
    B, V, E, K = 256, 256, 128, 16          # 2 batch tiles of 128 docs each
    key = jax.random.PRNGKey(0)
    k_bows, k_params = jax.random.split(key)

    # synthetic bag-of-words (strictly positive so the row-normalization is valid)
    bows = jax.random.uniform(k_bows, (B, V), jnp.float32, 0.1, 3.0)
    params = init_params(k_params, V, E, K)

    recon, kld = dan_etm_forward(bows, params)
    recon, kld = jax.block_until_ready((recon, kld))

    recon_ref, kld_ref = dan_etm_reference(bows, params)
    assert jnp.allclose(recon, recon_ref, rtol=2e-3, atol=2e-3), (recon, recon_ref)
    assert jnp.allclose(kld, kld_ref, rtol=2e-3, atol=2e-3), (kld, kld_ref)

    print("KERNEL_OK")
</pallas_src>

<mosaic_0001>
module attributes {stable_mosaic.version = 11 : i64} {
  func.func @beta_kernel(%arg0: i32, %arg1: memref<16x128xbf16, #tpu.memory_space<vmem>>, %arg2: memref<128x256xbf16, #tpu.memory_space<vmem>>, %arg3: memref<16x256xbf16, #tpu.memory_space<vmem>>) attributes {dimension_semantics = [#tpu.dimension_semantics<arbitrary>], iteration_bounds = array<i64: 1>, scalar_prefetch = 0 : i64, scratch_operands = 0 : i64, tpu.core_type = #tpu.core_type<tc>, window_params = [{pipeline_mode = #tpu.pipeline_mode<synchronous>, transform_indices = @transform_0, window_bounds = array<i64: 16, 128>}, {pipeline_mode = #tpu.pipeline_mode<synchronous>, transform_indices = @transform_1, window_bounds = array<i64: 128, 256>}, {pipeline_mode = #tpu.pipeline_mode<synchronous>, transform_indices = @transform_2, window_bounds = array<i64: 16, 256>}]} {
    %c0 = arith.constant 0 : index
    %c0_0 = arith.constant 0 : index
    %0 = vector.load %arg1[%c0, %c0_0] : memref<16x128xbf16, #tpu.memory_space<vmem>>, vector<16x128xbf16>
    %c0_1 = arith.constant 0 : index
    %c0_2 = arith.constant 0 : index
    %1 = vector.load %arg2[%c0_1, %c0_2] : memref<128x256xbf16, #tpu.memory_space<vmem>>, vector<128x256xbf16>
    %cst = arith.constant dense<0.000000e+00> : vector<16x256xf32>
    %2 = tpu.matmul %0, %1, %cst {dimension_numbers = #tpu.dot_dimension_numbers<[1], [0], [0], [1], [0, 0, 1, 1], [], []>} : vector<16x128xbf16>, vector<128x256xbf16>, vector<16x256xf32> -> vector<16x256xf32>
    %cst_3 = arith.constant dense<0xFF800000> : vector<16xf32>
    %3 = vector.multi_reduction <maximumf>, %2, %cst_3 [1] : vector<16x256xf32> to vector<16xf32>
    %4 = vector.shape_cast %3 : vector<16xf32> to vector<16x1xf32>
    %5 = vector.broadcast %4 : vector<16x1xf32> to vector<16x256xf32>
    %6 = arith.subf %2, %5 : vector<16x256xf32>
    %7 = math.exp %6 : vector<16x256xf32>
    %cst_4 = arith.constant dense<0.000000e+00> : vector<16xf32>
    %8 = vector.multi_reduction <add>, %7, %cst_4 [1] : vector<16x256xf32> to vector<16xf32>
    %9 = vector.shape_cast %8 : vector<16xf32> to vector<16x1xf32>
    %10 = vector.broadcast %9 : vector<16x1xf32> to vector<16x256xf32>
    %11 = arith.divf %7, %10 : vector<16x256xf32>
    %12 = arith.truncf %11 : vector<16x256xf32> to vector<16x256xbf16>
    %c0_5 = arith.constant 0 : index
    %c0_6 = arith.constant 0 : index
    %13 = vector.load %arg3[%c0_5, %c0_6] : memref<16x256xbf16, #tpu.memory_space<vmem>>, vector<16x256xbf16>
    tpu.vector_store %arg3[%c0_5, %c0_6], %12 {strides = array<i32>} : memref<16x256xbf16, #tpu.memory_space<vmem>>, vector<16x256xbf16>,
    return
  }
  func.func @transform_0(%arg0: i32) -> (i32, i32) {
    %c0_i32 = arith.constant 0 : i32
    %c0_i32_0 = arith.constant 0 : i32
    %c0_i32_1 = arith.constant 0 : i32
    return %c0_i32, %c0_i32_0 : i32, i32
  }
  func.func @transform_1(%arg0: i32) -> (i32, i32) {
    %c0_i32 = arith.constant 0 : i32
    %c0_i32_0 = arith.constant 0 : i32
    %c0_i32_1 = arith.constant 0 : i32
    return %c0_i32, %c0_i32_0 : i32, i32
  }
  func.func @transform_2(%arg0: i32) -> (i32, i32) {
    %c0_i32 = arith.constant 0 : i32
    %c0_i32_0 = arith.constant 0 : i32
    %c0_i32_1 = arith.constant 0 : i32
    return %c0_i32, %c0_i32_0 : i32, i32
  }
}

</mosaic_0001>

<bundles_post_ra>
// kernel: tpu_custom_call.1
= control target key start
LH: loop header
LB: loop body
LE: loop exit
PB: predicated region body
PF: predicated region fallthrough
CT: control target
= control target key end

     0   :  { %7 = vsyncpa [#allocation3], 0  ;;  %s420_s0 = inlined_call_operand.hbm [shape: bf16[16,128], index: 0, kind: input, shape index: {}]   ;;  %s421_s1 = inlined_call_operand.hbm [shape: bf16[128,256], index: 1, kind: input, shape index: {}]   ;;  %s422_s2 = inlined_call_operand.hbm [shape: bf16[16,256], index: 2, kind: output, shape index: {}]  }
   0x1   :  { %8 = vsyncpa [#allocation6], 0 }
   0x2   :  { %9 = vsyncpa [#allocation4], 0  ;;  %s382_s9 = smov [#allocation2]  }
   0x3   :  { %s15_s10 = sshll.u32 %s382_s9, 4  ;;  %s16_s10 = int_to_ptr.vmem [resolvable:$true] %s15_s10 }
   0x4   :  { %s324_s11 = scalar_lea.vmem %s16_s10, 128  ;;  %p329_p1 = scmp.lt.s32.totalorder %s16_s10, %s16_s10 }
   0x5   :  { %p325_p0 = scmp.ne.s32.totalorder %s16_s10, %s324_s11  ;;  %p330_p2 = scmp.lt.s32.totalorder %s324_s11, %s324_s11 }
   0x7   :  { %p331_p3 = por %p330_p2, %p329_p1 }
   0x9   :  { %p332_p4 = pnand %p331_p3, %p325_p0 }
   0xb   :  { %335 = shalt.err (!%p332_p4)
}
   0xc   :  { %s383_s12 = smov 64   ;;  %s384_s13 = smov 4  }
   0xd   :  { %21 = dma.hbm_to_vmem [thread:$0]  %s420_s0, 128, %s16_s10, [#allocation3], %s383_s12, %s383_s12, %s384_s13  }
   0xe   :  { %s385_s16 = smov [#allocation5]  }
   0xf   :  { %s27_s17 = sshll.u32 %s385_s16, 4  ;;  %s28_s17 = int_to_ptr.vmem [resolvable:$true] %s27_s17 }
  0x10   :  { %s344_s18 = scalar_lea.vmem %s28_s17, 2048  ;;  %p349_p6 = scmp.lt.s32.totalorder %s28_s17, %s28_s17 }
  0x11   :  { %p345_p5 = scmp.ne.s32.totalorder %s28_s17, %s344_s18  ;;  %p350_p7 = scmp.lt.s32.totalorder %s344_s18, %s344_s18 }
  0x13   :  { %p351_p8 = por %p350_p7, %p349_p6 }
  0x15   :  { %p352_p9 = pnand %p351_p8, %p345_p5 }
  0x17   :  { %355 = shalt.err (!%p352_p9)
}
  0x18   :  { %s386_s19 = smov 128   ;;  %s387_s20 = smov 8  }
  0x19   :  { %33 = dma.hbm_to_vmem [thread:$0]  %s421_s1, 2048, %s28_s17, [#allocation6], %s386_s19, %s386_s19, %s387_s20  }
  0x1a   :  { %376 = dma.done.wait [#allocation3], 128  }
  0x1b   :  { %377 = vsyncadd [#allocation3], 4294967168 }
  0x1c   :  { %378 = dma.done.wait [#allocation6], 2048  }
  0x1d   :  { %379 = vsyncadd [#allocation6], 4294965248  ;;  %v388_v0 = vmov 0   ;;  %v279_v1 = vld [vmem:[#allocation5 + $0x74] ss:$8 sps:$4 sm:$0xff]   ;;  %s389_s0 = smov [#allocation7]  }
  0x1e   :  { %177 = vmatprep.mubr.bf16.mxu0 %v388_v0  ;;  %v281_v2 = vld [vmem:[#allocation5 + $0x70] ss:$8 sps:$4 sm:$0xff]   ;;  %145 = vmatprep.subr.bf16.mxu0 %v279_v1  ;;  %v282_v3 = vld [vmem:[#allocation5 + $0x64] ss:$8 sps:$4 sm:$0xff]   ;;  %v284_v4 = vld [vmem:[#allocation5 + $0x60] ss:$8 sps:$4 sm:$0xff]  }
  0x1f   :  { %146 = vmatpush1.bf16.msra.mxu0 %v281_v2  ;;  %v285_v5 = vld [vmem:[#allocation5 + $0x54] ss:$8 sps:$4 sm:$0xff]   ;;  %v287_v6 = vld [vmem:[#allocation5 + $0x50] ss:$8 sps:$4 sm:$0xff]   ;;  %v288_v7 = vld [vmem:[#allocation5 + $0x44] ss:$8 sps:$4 sm:$0xff]  }
  0x20   :  { %147 = vmatprep.subr.bf16.mxu0 %v282_v3  ;;  %v290_v8 = vld [vmem:[#allocation5 + $0x40] ss:$8 sps:$4 sm:$0xff]   ;;  %v291_v9 = vld [vmem:[#allocation5 + $0x34] ss:$8 sps:$4 sm:$0xff]   ;;  %v293_v10 = vld [vmem:[#allocation5 + $0x30] ss:$8 sps:$4 sm:$0xff]  }
  0x21   :  { %v294_v11 = vld [vmem:[#allocation5 + $0x24] ss:$8 sps:$4 sm:$0xff]   ;;  %v296_v12 = vld [vmem:[#allocation5 + $0x20] ss:$8 sps:$4 sm:$0xff]   ;;  %v297_v13 = vld [vmem:[#allocation5 + $0x14] ss:$8 sps:$4 sm:$0xff]  }
  0x22   :  { %v299_v14 = vld [vmem:[#allocation5 + $0x10] ss:$8 sps:$4 sm:$0xff]   ;;  %v300_v15 = vld [vmem:[#allocation5 + $0x4] ss:$8 sps:$4 sm:$0xff]   ;;  %v302_v16 = vld [vmem:[#allocation5] ss:$8 sps:$4 sm:$0xff]  }
  0x23   :  { %148 = vmatpush1.bf16.msra.mxu0 %v284_v4  ;;  %v303_v17 = vld [vmem:[#allocation2] sm:$0xff]   ;;  %s237_s1 = sshll.u32 %s389_s0, 4  ;;  %s238_s1 = int_to_ptr.vmem [resolvable:$true] %s237_s1 }
  0x24   :  { %149 = vmatprep.subr.bf16.mxu0 %v285_v5  ;;  %s356_s23 = scalar_lea.vmem %s238_s1, 256  ;;  %p361_p11 = scmp.lt.s32.totalorder %s238_s1, %s238_s1 }
  0x25   :  { %p357_p10 = scmp.ne.s32.totalorder %s238_s1, %s356_s23  ;;  %p362_p12 = scmp.lt.s32.totalorder %s356_s23, %s356_s23 }
  0x27   :  { %150 = vmatpush1.bf16.msra.mxu0 %v287_v6  ;;  %p363_p13 = por %p362_p12, %p361_p11 }
  0x28   :  { %151 = vmatprep.subr.bf16.mxu0 %v288_v7 }
  0x29   :  { %p364_p0 = pnand %p363_p13, %p357_p10 }
  0x2b   :  { %152 = vmatpush1.bf16.msra.mxu0 %v290_v8 }
  0x2c   :  { %153 = vmatprep.subr.bf16.mxu0 %v291_v9 }
  0x2f   :  { %154 = vmatpush1.bf16.msra.mxu0 %v293_v10 }
  0x30   :  { %155 = vmatprep.subr.bf16.mxu0 %v294_v11 }
  0x33   :  { %156 = vmatpush1.bf16.msra.mxu0 %v296_v12 }
  0x34   :  { %157 = vmatprep.subr.bf16.mxu0 %v297_v13 }
  0x37   :  { %158 = vmatpush1.bf16.msra.mxu0 %v299_v14 }
  0x38   :  { %159 = vmatprep.subr.bf16.mxu0 %v300_v15 }
  0x3b   :  { %160 = vmatpush1.bf16.msra.mxu0 %v302_v16 }
  0x3e   :  { %178 = vmatmul.mubr.bf16.vlgmr.msra.gmra.mxu0 %v303_v17 }
  0xfe   :  { %v179_v18 = vpop.f32.mrf.mxu0 }
 0x100   :  { %v181_v19 = vpop.f32.mrf.mxu0 }
 0x101   :  { %v188_v20 = vmax.f32 %v179_v18, %v181_v19 }
 0x102   :  { %v183_v21 = vpop.f32.mrf.mxu0 }
 0x103   :  { %189 = vmax.xlane.f32.xlu0 %v188_v20 }
 0x104   :  { %v185_v22 = vpop.f32.mrf.mxu0 }
 0x105   :  { %v191_v23 = vmax.f32 %v183_v21, %v185_v22 }
 0x107   :  { %192 = vmax.xlane.f32.xlu0 %v191_v23 }
 0x18c   :  { %v190_v24 = vpop.xlane.xlu0 %189 }
 0x18d   :  { %v194_v25 = vsub.f32 %v179_v18, %v190_v24  ;;  %v195_v26 = vsub.f32 %v181_v19, %v190_v24 }
 0x18f   :  { %v198_v27 = vmul.f32 1.442695, %v194_v25  ;;  %v200_v28 = vmul.f32 1.442695, %v195_v26 }
 0x190   :  { %v193_v29 = vpop.xlane.xlu0 %192 }
 0x191   :  { %304 = vpow2.f32 %v198_v27  ;;  %v196_v30 = vsub.f32 %v183_v21, %v193_v29  ;;  %v197_v31 = vsub.f32 %v185_v22, %v193_v29 }
 0x192   :  { %306 = vpow2.f32 %v200_v28 }
 0x193   :  { %v202_v32 = vmul.f32 1.442695, %v196_v30  ;;  %v204_v33 = vmul.f32 1.442695, %v197_v31 }
 0x195   :  { %308 = vpow2.f32 %v202_v32 }
 0x196   :  { %310 = vpow2.f32 %v204_v33 }
 0x19e   :  { %v305_v34 = vpop.eup %304 }
 0x19f   :  { %v307_v35 = vpop.eup %306 }
 0x1a0   :  { %v206_v36 = vadd.f32 %v307_v35, %v305_v34 }
 0x1a2   :  { %v309_v37 = vpop.eup %308  ;;  %207 = vadd.xlane.f32.xlu1 %v206_v36 }
 0x1a3   :  { %v311_v38 = vpop.eup %310 }
 0x1a4   :  { %v209_v39 = vadd.f32 %v311_v38, %v309_v37 }
 0x1a6   :  { %210 = vadd.xlane.f32.xlu1 %v209_v39 }
 0x22b   :  { %v208_v40 = vpop.xlane.xlu1 %207 }
 0x22c   :  { %312 = vrcp.f32 %v208_v40 }
 0x22f   :  { %v211_v41 = vpop.xlane.xlu1 %210 }
 0x230   :  { %314 = vrcp.f32 %v211_v41 }
 0x239   :  { %v313_v42 = vpop.eup %312 }
 0x23a   :  { %v213_v43 = vmul.f32 %v313_v42, %v305_v34  ;;  %v214_v44 = vmul.f32 %v313_v42, %v307_v35 }
 0x23c   :  { %v269_v45 = vpack.c.bf16 %v214_v44, %v213_v43 }
 0x23d   :  { %v315_v46 = vpop.eup %314 }
 0x23e   :  { %v216_v47 = vmul.f32 %v315_v46, %v309_v37  ;;  %v217_v48 = vmul.f32 %v315_v46, %v311_v38  ;;  %230 = vst [vmem:[#allocation7] sm:$0xff] %v269_v45 }
 0x240   :  { %v270_v49 = vpack.c.bf16 %v217_v48, %v216_v47 }
 0x242   :  { %231 = vst [vmem:[#allocation7 + $0x8] sm:$0xff] %v270_v49 }
 0x243   :  { %367 = shalt.err (!%p364_p0)
}
 0x244   :  { %243 = dma.vmem_to_hbm [thread:$0]  %s238_s1, 256, %s422_s2, [#allocation4], %s386_s19, %s386_s19, %s387_s20  }
 0x245   :  { %380 = dma.done.wait [#allocation4], 256  }
 0x246   :  { %381 = vsyncadd [#allocation4], 4294967040 }
 0x247   :  { %247 = vsyncpa [#allocation3], 1 }
 0x248   :  { %248 = vsyncpa [#allocation6], 1 }
 0x249   :  { %249 = vsyncpa [#allocation4], 1 }

</bundles_post_ra>
